<compile_context>
chip_gen: v7x
topology: tpu7x:2x2x1
jax: 0.10.0
libtpu: 0.0.40
codegen_flags: <defaults>
</compile_context>

<pallas_src>
import functools

import jax
import jax.numpy as jnp
from jax.experimental import pallas as pl
from jax.experimental.pallas import tpu as pltpu

_MiB = 1 << 20


def _tpu_generation_params():
    """Returns (VMEM working-set budget in bytes, #TensorCores sharing the grid)."""
    kind = ""
    try:
        kind = str(jax.devices()[0].device_kind).lower()
    except Exception:
        pass
    if "v7" in kind:
        budget, cores = 26 * _MiB, 2      # 64 MiB VMEM per TC, 2 TCs per chip
    elif "v6" in kind:
        budget, cores = 56 * _MiB, 1      # 128 MiB VMEM, single TC
    else:                                 # v5e / unknown: conservative
        budget, cores = 14 * _MiB, 1
    try:
        vmem_cap = int(pltpu.get_tpu_info().vmem_capacity_bytes)
        budget = min(budget, int(0.45 * vmem_cap))
    except Exception:
        pass
    return budget, cores


def _prompt_assemble_kernel(prefix_hbm, ctx_ref, suffix_hbm, out_ref, sems, *,
                            n_ctx, csc, n_cls, class_block, seq_len):
    # prefix_hbm : (n_cls, 1, D)                HBM (pl.ANY)
    # ctx_ref    : (n_cls, n_ctx, D) HBM if csc else (1, n_ctx, D) VMEM block
    # suffix_hbm : (n_cls, S - 1 - n_ctx, D)    HBM (pl.ANY)
    # out_ref    : (class_block, S, D)          pipelined VMEM output block
    d = out_ref.shape[-1]
    suf_len = seq_len - 1 - n_ctx
    cb = class_block
    num_steps = (n_cls + cb - 1) // cb
    i = pl.program_id(0)

    def assemble(nrows):
        c0 = pl.multiple_of(i * cb, cb)   # first class handled by this step

        if csc:
            # Class-specific ctx: pure DMA into out[:, 1:1+n_ctx, :].  Waited
            # before the prefix/suffix copies start so that, for packed dtypes
            # (bf16), two writers never touch the same 32-bit word concurrently.
            ctx_cp = pltpu.make_async_copy(
                ctx_ref.at[pl.ds(c0, nrows)],
                out_ref.at[pl.ds(0, nrows), pl.ds(1, n_ctx), :],
                sems.at[2])
            ctx_cp.start()
            ctx_cp.wait()
        else:
            # Shared (generic) ctx: broadcast across the class rows on the VPU
            # path (a small fraction of the bytes).  Local stores are visible
            # to DMAs issued afterwards, so no ordering hazard with the copies
            # below; out-of-range rows of a partial block are clipped on
            # writeback.
            out_ref[:, 1:1 + n_ctx, :] = jnp.broadcast_to(
                ctx_ref[...], (cb, n_ctx, d))

        # Bulk bytes (prefix + suffix) go HBM -> output VMEM block directly at
        # the right sequence offsets; the two copies touch disjoint rows, so
        # they run concurrently.
        pre_cp = pltpu.make_async_copy(
            prefix_hbm.at[pl.ds(c0, nrows)],
            out_ref.at[pl.ds(0, nrows), pl.ds(0, 1), :],
            sems.at[0])
        suf_cp = pltpu.make_async_copy(
            suffix_hbm.at[pl.ds(c0, nrows)],
            out_ref.at[pl.ds(0, nrows), pl.ds(1 + n_ctx, suf_len), :],
            sems.at[1])
        pre_cp.start()
        suf_cp.start()
        pre_cp.wait()
        suf_cp.wait()

    rem = n_cls % cb
    if rem == 0:
        assemble(cb)
    else:
        # Last grid step is partial: use a statically sized copy of exactly
        # `rem` classes so the manual DMAs never read out of bounds.  Rows
        # [rem, cb) of the output block are stale but clipped on writeback.
        @pl.when(i < num_steps - 1)
        def _():
            assemble(cb)

        @pl.when(i == num_steps - 1)
        def _():
            assemble(rem)


def prompt_learner_forward(ctx, token_prefix, token_suffix, *, class_block=None):
    """prompts = concat([prefix, ctx, suffix], axis=1)  ("end" class-token position).

    ctx          : (n_ctx, D) shared context  OR  (n_cls, n_ctx, D) class-specific
    token_prefix : (n_cls, 1, D)
    token_suffix : (n_cls, S - 1 - n_ctx, D)
    returns      : (n_cls, S, D) in token_prefix.dtype
    """
    n_cls, one, d = token_prefix.shape
    assert one == 1
    out_dtype = token_prefix.dtype
    suf_len = token_suffix.shape[1]

    csc = (ctx.ndim == 3)
    if csc:
        assert ctx.shape[0] == n_cls
        n_ctx = ctx.shape[1]
        ctx_in = ctx.astype(out_dtype)
    else:
        n_ctx = ctx.shape[0]
        ctx_in = ctx.astype(out_dtype).reshape(1, n_ctx, d)

    seq_len = 1 + n_ctx + suf_len
    itemsize = jnp.dtype(out_dtype).itemsize

    budget, cores = _tpu_generation_params()
    per_class_bytes = seq_len * d * itemsize
    ctx_vmem_bytes = 0 if csc else n_ctx * d * itemsize

    if class_block is None:
        # Generation-aware class blocking.  Only the output block is VMEM
        # resident (double-buffered) plus the tiny shared-ctx block, so size
        # the block to the per-generation budget, then split the grid into an
        # even number of equal steps so v7x's two TensorCores stay balanced.
        avail = max(budget - 2 * ctx_vmem_bytes, 2 * per_class_bytes)
        cb_max = max(1, int(avail // (2 * per_class_bytes)))
        cb_max = min(cb_max, n_cls)
        n_steps = -(-n_cls // cb_max)
        if cores > 1 and n_cls >= cores:
            n_steps = -(-n_steps // cores) * cores
            n_steps = min(n_steps, n_cls)
        class_block = -(-n_cls // n_steps)
    class_block = int(min(max(int(class_block), 1), n_cls))
    grid = (-(-n_cls // class_block),)

    # Double-buffered output block + resident shared-ctx block (+ headroom).
    working_set = 2 * class_block * per_class_bytes + 2 * ctx_vmem_bytes
    vmem_limit = int(max(32 * _MiB, working_set + 4 * _MiB))

    any_spec = pl.BlockSpec(memory_space=pl.ANY)
    if csc:
        ctx_spec = pl.BlockSpec(memory_space=pl.ANY)
    else:
        ctx_spec = pl.BlockSpec((1, n_ctx, d), lambda i: (0, 0, 0))

    kernel = functools.partial(_prompt_assemble_kernel, n_ctx=n_ctx, csc=csc,
                               n_cls=n_cls, class_block=class_block,
                               seq_len=seq_len)

    bytes_accessed = int(itemsize * (token_prefix.size + ctx_in.size
                                     + token_suffix.size + n_cls * seq_len * d))

    return pl.pallas_call(
        kernel,
        out_shape=jax.ShapeDtypeStruct((n_cls, seq_len, d), out_dtype),
        grid_spec=pltpu.PrefetchScalarGridSpec(
            num_scalar_prefetch=0,
            grid=grid,
            in_specs=[any_spec, ctx_spec, any_spec],
            out_specs=pl.BlockSpec((class_block, seq_len, d),
                                   lambda i: (i, 0, 0)),
            scratch_shapes=[pltpu.SemaphoreType.DMA((3,))],
        ),
        compiler_params=pltpu.CompilerParams(
            dimension_semantics=("parallel",),
            vmem_limit_bytes=vmem_limit),
        cost_estimate=pl.CostEstimate(flops=0, transcendentals=0,
                                      bytes_accessed=bytes_accessed),
    )(token_prefix, ctx_in, token_suffix)


if __name__ == "__main__":
    # Small, deterministic synthetic configuration (mirrors __init__ shapes,
    # scaled down: ctx_dim 768 -> 128, max token len 77 -> 16).
    key = jax.random.PRNGKey(0)
    ks = jax.random.split(key, 6)

    n_ctx, ctx_dim, seq_len = 4, 128, 16
    suf_len = seq_len - 1 - n_ctx

    def ref_concat(ctx_a, pre_a, suf_a):
        c = ctx_a
        if c.ndim == 2:
            c = jnp.broadcast_to(c[None], (pre_a.shape[0],) + c.shape)
        return jnp.concatenate([pre_a, c.astype(pre_a.dtype), suf_a], axis=1)

    # ---- Test 1: generic (shared) context, float32, exact-multiple grid (3 x 4)
    n_cls = 12
    ctx = 0.02 * jax.random.normal(ks[0], (n_ctx, ctx_dim), dtype=jnp.float32)
    pre = jax.random.normal(ks[1], (n_cls, 1, ctx_dim), dtype=jnp.float32)
    suf = jax.random.normal(ks[2], (n_cls, suf_len, ctx_dim), dtype=jnp.float32)

    out1 = jax.block_until_ready(
        prompt_learner_forward(ctx, pre, suf, class_block=4))
    assert out1.shape == (n_cls, seq_len, ctx_dim) and out1.dtype == jnp.float32
    assert jnp.array_equal(out1, ref_concat(ctx, pre, suf)), "mismatch (generic ctx)"

    # ---- Test 2: partial last grid step (10 classes, block 4 -> rem 2)
    out2 = jax.block_until_ready(
        prompt_learner_forward(ctx, pre[:10], suf[:10], class_block=4))
    assert out2.shape == (10, seq_len, ctx_dim)
    assert jnp.array_equal(out2, ref_concat(ctx, pre[:10], suf[:10])), \
        "mismatch (generic ctx, partial block)"

    # ---- Test 3: class-specific context (CSC), bf16, partial last step (9, rem 1)
    n3 = 9
    ctx3 = (0.02 * jax.random.normal(
        ks[3], (n3, n_ctx, ctx_dim), dtype=jnp.float32)).astype(jnp.bfloat16)
    pre3 = jax.random.normal(
        ks[4], (n3, 1, ctx_dim), dtype=jnp.float32).astype(jnp.bfloat16)
    suf3 = jax.random.normal(
        ks[5], (n3, suf_len, ctx_dim), dtype=jnp.float32).astype(jnp.bfloat16)

    out3 = jax.block_until_ready(
        prompt_learner_forward(ctx3, pre3, suf3, class_block=4))
    assert out3.shape == (n3, seq_len, ctx_dim) and out3.dtype == jnp.bfloat16
    assert jnp.array_equal(out3.astype(jnp.float32),
                           ref_concat(ctx3, pre3, suf3).astype(jnp.float32)), \
        "mismatch (CSC / bf16, partial block)"

    # ---- Test 4: automatic generation-aware class blocking
    out4 = jax.block_until_ready(prompt_learner_forward(ctx, pre, suf))
    assert jnp.array_equal(out4, ref_concat(ctx, pre, suf)), "mismatch (auto block)"

    print("KERNEL_OK")
</pallas_src>

<mosaic_0001>
module attributes {stable_mosaic.version = 11 : i64} {
  func.func @_prompt_assemble_kernel(%arg0: i32, %arg1: memref<12x1x128xf32, #tpu.memory_space<any>>, %arg2: memref<1x4x128xf32, #tpu.memory_space<vmem>>, %arg3: memref<12x11x128xf32, #tpu.memory_space<any>>, %arg4: memref<4x16x128xf32, #tpu.memory_space<vmem>>, %arg5: memref<3x!tpu.dma_semaphore, #tpu.memory_space<semaphore_mem>>) attributes {dimension_semantics = [#tpu.dimension_semantics<parallel>], iteration_bounds = array<i64: 3>, scalar_prefetch = 0 : i64, scratch_operands = 1 : i64, tpu.core_type = #tpu.core_type<tc>, window_params = [{}, {pipeline_mode = #tpu.pipeline_mode<synchronous>, transform_indices = @transform_1, window_bounds = array<i64: 1, 4, 128>}, {}, {transform_indices = @transform_3, window_bounds = array<i64: 4, 16, 128>}]} {
    %c4_i32 = arith.constant 4 : i32
    %0 = arith.muli %arg0, %c4_i32 : i32
    %1 = tpu.assume_multiple %0, 4 : i32
    %c0 = arith.constant 0 : index
    %c0_0 = arith.constant 0 : index
    %c0_1 = arith.constant 0 : index
    %2 = vector.load %arg2[%c0, %c0_0, %c0_1] : memref<1x4x128xf32, #tpu.memory_space<vmem>>, vector<1x4x128xf32>
    %3 = vector.shape_cast %2 : vector<1x4x128xf32> to vector<1x4x128xf32>
    %4 = vector.broadcast %3 : vector<1x4x128xf32> to vector<4x4x128xf32>
    %c0_2 = arith.constant 0 : index
    %c1 = arith.constant 1 : index
    %c0_3 = arith.constant 0 : index
    %5 = vector.load %arg4[%c0_2, %c1, %c0_3] : memref<4x16x128xf32, #tpu.memory_space<vmem>>, vector<4x4x128xf32>
    tpu.vector_store %arg4[%c0_2, %c1, %c0_3], %4 {strides = array<i32>} : memref<4x16x128xf32, #tpu.memory_space<vmem>>, vector<4x4x128xf32>,
    %c0_i32 = arith.constant 0 : i32
    %c0_i32_4 = arith.constant 0 : i32
    %c0_i32_5 = arith.constant 0 : i32
    %6 = tpu.memref_slice %arg1[%1, %c0_i32_4, %c0_i32_5] : memref<12x1x128xf32, #tpu.memory_space<any>> -> memref<4x1x128xf32, #tpu.memory_space<any>>
    %c0_i32_6 = arith.constant 0 : i32
    %c0_i32_7 = arith.constant 0 : i32
    %c0_i32_8 = arith.constant 0 : i32
    %7 = tpu.memref_slice %arg4[%c0_i32_6, %c0_i32_7, %c0_i32_8] : memref<4x16x128xf32, #tpu.memory_space<vmem>> -> memref<4x1x128xf32, #tpu.memory_space<vmem>>
    %8 = tpu.memref_slice %arg5[%c0_i32] : memref<3x!tpu.dma_semaphore, #tpu.memory_space<semaphore_mem>> -> memref<1x!tpu.dma_semaphore, #tpu.memory_space<semaphore_mem>>
    %9 = tpu.memref_squeeze %8 : memref<1x!tpu.dma_semaphore, #tpu.memory_space<semaphore_mem>> -> memref<!tpu.dma_semaphore, #tpu.memory_space<semaphore_mem>>
    tpu.enqueue_dma source(%6 : memref<4x1x128xf32, #tpu.memory_space<any>>) target(%7 : memref<4x1x128xf32, #tpu.memory_space<vmem>>) target_semaphore(%9 : memref<!tpu.dma_semaphore, #tpu.memory_space<semaphore_mem>>)
    %c1_i32 = arith.constant 1 : i32
    %c0_i32_9 = arith.constant 0 : i32
    %c0_i32_10 = arith.constant 0 : i32
    %10 = tpu.memref_slice %arg3[%1, %c0_i32_9, %c0_i32_10] : memref<12x11x128xf32, #tpu.memory_space<any>> -> memref<4x11x128xf32, #tpu.memory_space<any>>
    %c0_i32_11 = arith.constant 0 : i32
    %c5_i32 = arith.constant 5 : i32
    %c0_i32_12 = arith.constant 0 : i32
    %11 = tpu.memref_slice %arg4[%c0_i32_11, %c5_i32, %c0_i32_12] : memref<4x16x128xf32, #tpu.memory_space<vmem>> -> memref<4x11x128xf32, #tpu.memory_space<vmem>>
    %12 = tpu.memref_slice %arg5[%c1_i32] : memref<3x!tpu.dma_semaphore, #tpu.memory_space<semaphore_mem>> -> memref<1x!tpu.dma_semaphore, #tpu.memory_space<semaphore_mem>>
    %13 = tpu.memref_squeeze %12 : memref<1x!tpu.dma_semaphore, #tpu.memory_space<semaphore_mem>> -> memref<!tpu.dma_semaphore, #tpu.memory_space<semaphore_mem>>
    tpu.enqueue_dma source(%10 : memref<4x11x128xf32, #tpu.memory_space<any>>) target(%11 : memref<4x11x128xf32, #tpu.memory_space<vmem>>) target_semaphore(%13 : memref<!tpu.dma_semaphore, #tpu.memory_space<semaphore_mem>>)
    %c0_i32_13 = arith.constant 0 : i32
    %c0_i32_14 = arith.constant 0 : i32
    %c0_i32_15 = arith.constant 0 : i32
    %14 = tpu.memref_slice %arg1[%1, %c0_i32_14, %c0_i32_15] : memref<12x1x128xf32, #tpu.memory_space<any>> -> memref<4x1x128xf32, #tpu.memory_space<any>>
    %c0_i32_16 = arith.constant 0 : i32
    %c0_i32_17 = arith.constant 0 : i32
    %c0_i32_18 = arith.constant 0 : i32
    %15 = tpu.memref_slice %arg4[%c0_i32_16, %c0_i32_17, %c0_i32_18] : memref<4x16x128xf32, #tpu.memory_space<vmem>> -> memref<4x1x128xf32, #tpu.memory_space<vmem>>
    %16 = tpu.memref_slice %arg5[%c0_i32_13] : memref<3x!tpu.dma_semaphore, #tpu.memory_space<semaphore_mem>> -> memref<1x!tpu.dma_semaphore, #tpu.memory_space<semaphore_mem>>
    %17 = tpu.memref_squeeze %16 : memref<1x!tpu.dma_semaphore, #tpu.memory_space<semaphore_mem>> -> memref<!tpu.dma_semaphore, #tpu.memory_space<semaphore_mem>>
    tpu.wait_dma2 semaphore(%17 : memref<!tpu.dma_semaphore, #tpu.memory_space<semaphore_mem>>) src(%14 : memref<4x1x128xf32, #tpu.memory_space<any>>) dst(%15 : memref<4x1x128xf32, #tpu.memory_space<vmem>>)
    %c1_i32_19 = arith.constant 1 : i32
    %c0_i32_20 = arith.constant 0 : i32
    %c0_i32_21 = arith.constant 0 : i32
    %18 = tpu.memref_slice %arg3[%1, %c0_i32_20, %c0_i32_21] : memref<12x11x128xf32, #tpu.memory_space<any>> -> memref<4x11x128xf32, #tpu.memory_space<any>>
    %c0_i32_22 = arith.constant 0 : i32
    %c5_i32_23 = arith.constant 5 : i32
    %c0_i32_24 = arith.constant 0 : i32
    %19 = tpu.memref_slice %arg4[%c0_i32_22, %c5_i32_23, %c0_i32_24] : memref<4x16x128xf32, #tpu.memory_space<vmem>> -> memref<4x11x128xf32, #tpu.memory_space<vmem>>
    %20 = tpu.memref_slice %arg5[%c1_i32_19] : memref<3x!tpu.dma_semaphore, #tpu.memory_space<semaphore_mem>> -> memref<1x!tpu.dma_semaphore, #tpu.memory_space<semaphore_mem>>
    %21 = tpu.memref_squeeze %20 : memref<1x!tpu.dma_semaphore, #tpu.memory_space<semaphore_mem>> -> memref<!tpu.dma_semaphore, #tpu.memory_space<semaphore_mem>>
    tpu.wait_dma2 semaphore(%21 : memref<!tpu.dma_semaphore, #tpu.memory_space<semaphore_mem>>) src(%18 : memref<4x11x128xf32, #tpu.memory_space<any>>) dst(%19 : memref<4x11x128xf32, #tpu.memory_space<vmem>>)
    return
  }
  func.func @transform_1(%arg0: i32) -> (i32, i32, i32) {
    %c0_i32 = arith.constant 0 : i32
    %c0_i32_0 = arith.constant 0 : i32
    %c0_i32_1 = arith.constant 0 : i32
    %c0_i32_2 = arith.constant 0 : i32
    return %c0_i32, %c0_i32_0, %c0_i32_1 : i32, i32, i32
  }
  func.func @transform_3(%arg0: i32) -> (i32, i32, i32) {
    %c0_i32 = arith.constant 0 : i32
    %c0_i32_0 = arith.constant 0 : i32
    %c0_i32_1 = arith.constant 0 : i32
    return %arg0, %c0_i32, %c0_i32_0 : i32, i32, i32
  }
}

</mosaic_0001>

<bundles_post_ra>
// kernel: tpu_custom_call.1
= control target key start
LH: loop header
LB: loop body
LE: loop exit
PB: predicated region body
PF: predicated region fallthrough
CT: control target
= control target key end

     0   :  { %8 = vsyncpa [#allocation4], 0  ;;  %s658_s0 = inlined_call_operand.vmem [shape: f32[12,1,128], index: 0, kind: input, shape index: {}]   ;;  %s659_s1 = inlined_call_operand.vmem [shape: f32[1,4,128], index: 1, kind: input, shape index: {}]   ;;  %s660_s2 = inlined_call_operand.vmem [shape: f32[12,11,128], index: 2, kind: input, shape index: {}]   ;;  %s661_s3 = inlined_call_operand.hbm [shape: f32[12,16,128], index: 3, kind: output, shape index: {}]  }
   0x1   :  { %10 = vsyncpa [#allocation4 + $0x1], 0  ;;  %s526_s12 = smov 0   ;;  %s528_s13 = smov 0  }
   0x2   :  { %s530_s14 = smov 0   ;;  %s532_s15 = smov 0  }
   0x3 LB: > { %s547_s16 = sadd.s32 4294967295, %s501_s15   ;;  %s359_s17 = sadd.s32 4294967294, %s501_s15   ;;  %s501_s15 = sphi %s532_s15, %s667_s15   ;;  %s497_s14 = sphi %s530_s14, %s666_s14   ;;  %s493_s13 = sphi %s528_s13, %s665_s13   ;;  %s489_s12 = sphi %s526_s12, %s664_s12  }
   0x4   : > { %s551_s18 = sadd.s32 1, %s501_s15   ;;  %s44_s19 = sadd.s32 1, %s497_s14 }
   0x5   : > { %s41_s20 = ssub.s32 %s501_s15, %s551_s18  ;;  %p54_p0 = scmp.ne.s32.totalorder %s497_s14, %s493_s13 }
   0x6   : > { %p42_p1 = scmp.eq.s32.totalorder %s41_s20, 0  ;;  %p55_p2 = scmp.eq.s32.totalorder %s547_s16, 2 }
   0x7   : > { %p60_p3 = scmp.ne.s32.totalorder %s493_s13, %s489_s12  ;;  %p61_p4 = scmp.eq.s32.totalorder %s359_s17, 2 }
   0x8   : > { %s562_s21 = scalar_select %p42_p1, %s497_s14, %s44_s19  }
   0x9   : > { %p564_p5 = por %p55_p2, %p54_p0  ;;  %p568_p6 = por %p61_p4, %p60_p3 }
   0xa   : > { %p361_p7 = scmp.ge.s32.totalorder %s501_s15, 1  ;;  %p82_p8 = scmp.lt.s32.totalorder %s501_s15, 4 }
   0xc   : > { %p83_p9 = pnand %p361_p7, %p82_p8 }
   0xd   : > { %s94_s24 = sand.u32 (!%p83_p9), 1, %s493_s13   ;;  %v99_v0 = vld [vmem:[%s659_s1] sm:$0xf] (!%p83_p9)  ;;  %s363_s27 = sshll.u32 (!%p83_p9), %s547_s16, 2 }
   0xe   : > { %86 = sbr.rel (%p83_p9) target bundleno = 57 (0x39), region = 24  ;;  %s362_s28 = sshll.u32 (!%p83_p9), %s94_s24, 6 }
   0xf   : > { %s104_s4 = scalar_lea.vmem (!%p83_p9), %s658_s0, %s363_s27  ;;  %s584_s5 = scalar_lea.vmem (!%p83_p9), [#allocation3], %s362_s28 }
  0x10   : > { %v122_v1 = vld [vmem:[%s104_s4] sm:$0x1] (!%p83_p9)  ;;  %v124_v2 = vld [vmem:[%s104_s4 + $0x1] sm:$0x1] (!%p83_p9)  ;;  %100 = vst [vmem:[%s584_s5 + $0x1] sm:$0xf] (!%p83_p9), %v99_v0 }
  0x11   : > { %101 = vst [vmem:[%s584_s5 + $0x11] sm:$0xf] (!%p83_p9), %v99_v0  ;;  %102 = vst [vmem:[%s584_s5 + $0x21] sm:$0xf] (!%p83_p9), %v99_v0  ;;  %v126_v3 = vld [vmem:[%s104_s4 + $0x2] sm:$0x1] (!%p83_p9) }
  0x12   : > { %103 = vst [vmem:[%s584_s5 + $0x31] sm:$0xf] (!%p83_p9), %v99_v0  ;;  %123 = vst [vmem:[%s584_s5] sm:$0x1] (!%p83_p9), %v122_v1  ;;  %v128_v4 = vld [vmem:[%s104_s4 + $0x3] sm:$0x1] (!%p83_p9) }
  0x13   : > { %125 = vst [vmem:[%s584_s5 + $0x10] sm:$0x1] (!%p83_p9), %v124_v2  ;;  %127 = vst [vmem:[%s584_s5 + $0x20] sm:$0x1] (!%p83_p9), %v126_v3 }
  0x14   : > { %129 = vst [vmem:[%s584_s5 + $0x30] sm:$0x1] (!%p83_p9), %v128_v4 }
  0x15   : > { %160 = vsyncadd [#allocation2], 64  ;;  %s391_s6 = sshll.u32 %s547_s16, 6 }
  0x16   : > { %s162_s9 = scalar_lea.vmem %s660_s2, %s391_s6 }
  0x17   : > { %v208_v5 = vld [vmem:[%s162_s9] sm:$0xff]  ;;  %v210_v6 = vld [vmem:[%s162_s9 + $0x10] sm:$0xff]  ;;  %v370_v9 = vld [vmem:[%s162_s9 + $0x8] sm:$0x7] }
  0x18   : > { %v212_v7 = vld [vmem:[%s162_s9 + $0x20] sm:$0xff]  ;;  %366 = vst [vmem:[%s584_s5 + $0x5] sm:$0xff] %v208_v5  ;;  %367 = vst [vmem:[%s584_s5 + $0x15] sm:$0xff] %v210_v6  ;;  %v214_v8 = vld [vmem:[%s162_s9 + $0x30] sm:$0xff] }
  0x19   : > { %368 = vst [vmem:[%s584_s5 + $0x25] sm:$0xff] %v212_v7  ;;  %v372_v10 = vld [vmem:[%s162_s9 + $0x18] sm:$0x7]  ;;  %369 = vst [vmem:[%s584_s5 + $0x35] sm:$0xff] %v214_v8  ;;  %v374_v11 = vld [vmem:[%s162_s9 + $0x28] sm:$0x7] }
  0x1a   : > { %371 = vst [vmem:[%s584_s5 + $0xd] sm:$0x7] %v370_v9  ;;  %373 = vst [vmem:[%s584_s5 + $0x1d] sm:$0x7] %v372_v10  ;;  %v376_v12 = vld [vmem:[%s162_s9 + $0x38] sm:$0x7] }
  0x1b   : > { %375 = vst [vmem:[%s584_s5 + $0x2d] sm:$0x7] %v374_v11  ;;  %377 = vst [vmem:[%s584_s5 + $0x3d] sm:$0x7] %v376_v12 }
  0x1c   : > { %236 = vsyncadd [#allocation2 + $0x1], 704 }
  0x1d   : > { %479 = dma.done.wait [#allocation2], 64 }
  0x1e   : > { %480 = vsyncadd [#allocation2], 4294967232 }
  0x1f   : > { %481 = dma.done.wait [#allocation2 + $0x1], 704 }
  0x20   : > { %482 = vsyncadd [#allocation2 + $0x1], 4294966592  ;;  %s393_s10 = sshll.u32 %s547_s16, 10  ;;  %s260_s20 = sshll.u32 %s584_s5, 4  ;;  %s613_s20 = int_to_ptr.vmem [resolvable:$true] %s260_s20 }
  0x21   : > { %s610_s19 = scalar_lea.hbm %s661_s3, %s393_s10  ;;  %s617_s25 = scalar_lea.sflag [#allocation4], %s94_s24 }
  0x22   : > { %s435_s26 = scalar_lea.vmem %s613_s20, 1024  ;;  %s503_s16 = smov [#allocation3]  }
  0x23   : > { %p436_p10 = scmp.ne.s32.totalorder %s613_s20, %s435_s26  ;;  %s439_s27 = sshll.u32 %s503_s16, 4  ;;  %s440_s27 = int_to_ptr.vmem [resolvable:$false] %s439_s27 }
  0x24   : > { %s441_s28 = scalar_lea.vmem %s440_s27, 2048  ;;  %p442_p13 = scmp.lt.s32.totalorder %s613_s20, %s440_s27 }
  0x25   : > { %p437_p11 = pnand %p436_p10, %p564_p5  ;;  %p443_p0 = scmp.lt.s32.totalorder %s441_s28, %s435_s26 }
  0x27   : > { %p438_p12 = pneg %p437_p11  ;;  %p444_p1 = por %p443_p0, %p442_p13 }
  0x29   : > { %p445_p2 = pnand %p444_p1, %p438_p12 }
  0x2b   : > { %448 = shalt.err (!%p445_p2)
}
  0x2c   : > { %s449_s24 = scalar_lea.hbm %s610_s19, 1024  ;;  %s453_s4 = scalar_lea.hbm %s661_s3, 3072 }
  0x2d   : > { %p450_p3 = scmp.ne.s32.totalorder %s610_s19, %s449_s24  ;;  %p454_p8 = scmp.lt.u32.totalorder %s610_s19, %s661_s3 }
  0x2e   : > { %p455_p9 = scmp.lt.u32.totalorder %s453_s4, %s449_s24  ;;  %p457_p11 = scmp.lt.u32.totalorder %s449_s24, %s610_s19 }
  0x2f   : > { %p451_p4 = pnand %p450_p3, %p564_p5 }
  0x30   : > { %p456_p10 = por %p455_p9, %p454_p8 }
  0x31   : > { %p452_p7 = pneg %p451_p4 }
  0x32   : > { %p458_p12 = por %p457_p11, %p456_p10 }
  0x34   : > { %p459_p13 = pnand %p458_p12, %p452_p7 }
  0x36   : > { %462 = shalt.err (!%p459_p13)
}
  0x37   : > { %s504_s7 = smov 128   ;;  %s505_s8 = smov 8  }
  0x38   : > { %394 = dma.vmem_to_hbm [thread:$0]  (%p564_p5), %s613_s20, 1024, %s610_s19, %s617_s25, %s504_s7, %s504_s7, %s505_s8  }
  0x39 PF: > { %p400_p0 = scmp.ge.s32.totalorder %s501_s15, 2  ;;  %s275_s9 = sand.u32 1, %s489_s12  }
  0x3a   : > { %s276_s10 = scalar_lea.sflag [#allocation4], %s275_s9 }
  0x3b   : > { %p397_p1 = pnand %p400_p0, %p568_p6 }
  0x3d   : > { %484 = dma.done.wait (!%p397_p1), %s276_s10, 1024  }
  0x3e   : > { %486 = vsyncadd (!%p397_p1), %s276_s10, 4294966272  ;;  %p13_p2 = scmp.ge.s32.totalorder %s551_s18, 5   ;;  %s664_s12 = smov %s493_s13 }
  0x3f   : > { %s665_s13 = smov %s497_s14  ;;  %s666_s14 = smov %s562_s21 }
  0x40   : > { %s667_s15 = smov %s551_s18  ;;  %15 = sbr.rel (!%p13_p2) target bundleno = 3 (0x3), region = 153 }
  0x47   :  { %281 = vsyncpa [#allocation4], 1 }
  0x48   :  { %283 = vsyncpa [#allocation4 + $0x1], 1 }
  0x49   :  { %284 = vsyncmov [#allocation2] }
  0x4c   :  { %s285_s15 = vpop.sfrf %284 }
  0x4d   :  { %p388_p5 = scmp.ne.s32.totalorder %s285_s15, 0 }
  0x4f   :  { %289 = shalt.err (%p388_p5)  }
  0x50   :  { %291 = vsyncmov [#allocation2 + $0x1] }
  0x53   :  { %s292_s22 = vpop.sfrf %291 }
  0x54   :  { %p389_p6 = scmp.ne.s32.totalorder %s292_s22, 0 }
  0x56   :  { %296 = shalt.err (%p389_p6)  }
  0x57   :  { %298 = vsyncmov [#allocation2 + $0x2] }
  0x5a   :  { %s299_s23 = vpop.sfrf %298 }
  0x5b   :  { %p390_p3 = scmp.ne.s32.totalorder %s299_s23, 0 }
  0x5d   :  { %303 = shalt.err (%p390_p3)  }

</bundles_post_ra>
